<compile_context>
chip_gen: v5e
topology: v5e:2x2
jax: 0.10.0
libtpu: 0.0.40
codegen_flags: <defaults>
</compile_context>

<pallas_src>
import functools

import jax
import jax.numpy as jnp
from jax import lax
from jax.experimental import pallas as pl
from jax.experimental.pallas import tpu as pltpu

EPS = 1e-5
_VMEM_LIMIT = 32 * 1024 * 1024  # conservative: safe on v5e / v6e / v7x


# ---------------------------------------------------------------------------
# Kernel 1: fused channel LayerNorm (over C) + 1x1 projection, NCHW layout.
#   WithBias : y = (x - mu) / sqrt(var + eps) * gamma + beta
#   BiasFree : y =  x       / sqrt(var + eps) * gamma
#   out      = W_proj @ y     (contraction over C on the MXU, bf16 operands, f32 acc)
# ---------------------------------------------------------------------------
def _ln_proj_kernel(x_ref, g_ref, b_ref, w_ref, o_ref, *, with_bias):
    x = x_ref[...][0].astype(jnp.float32)                    # (C, TN)
    inv_c = 1.0 / x.shape[0]
    mu = jnp.sum(x, axis=0, keepdims=True) * inv_c           # E[x]    (1, TN)
    s2 = jnp.sum(x * x, axis=0, keepdims=True) * inv_c       # E[x^2]  (1, TN)
    inv = lax.rsqrt(s2 - mu * mu + EPS)                      # (1, TN)
    g = g_ref[...].astype(jnp.float32)                       # (C, 1)
    if with_bias:
        y = (x - mu) * inv * g + b_ref[...].astype(jnp.float32)
    else:
        y = x * inv * g
    w = w_ref[...]                                           # (O, C) bf16
    out = lax.dot_general(w, y.astype(w.dtype),
                          (((1,), (0,)), ((), ())),
                          preferred_element_type=jnp.float32)  # (O, TN)
    o_ref[...] = out[None].astype(o_ref.dtype)


def layernorm_proj(x, gamma, beta, w_proj, *, with_bias=True, block_n=1024):
    """x: (B, C, N); gamma/beta: (C,); w_proj: (O, C).
    Returns (B, O, N) = W_proj @ LayerNorm_over_C(x), tiled along N."""
    B, C, N = x.shape
    O = w_proj.shape[0]
    tn = N if N <= block_n else block_n                      # block_n multiple of 128
    grid = (B, pl.cdiv(N, tn))

    g2 = gamma.reshape(C, 1).astype(jnp.float32)
    beta_arr = beta if beta is not None else jnp.zeros((C,), jnp.float32)
    b2 = beta_arr.reshape(C, 1).astype(jnp.float32)
    wp = w_proj.astype(jnp.bfloat16)

    kernel = functools.partial(_ln_proj_kernel, with_bias=with_bias)
    return pl.pallas_call(
        kernel,
        out_shape=jax.ShapeDtypeStruct((B, O, N), x.dtype),
        grid_spec=pltpu.PrefetchScalarGridSpec(
            num_scalar_prefetch=0,
            grid=grid,
            in_specs=[
                pl.BlockSpec((1, C, tn), lambda b, n: (b, 0, n)),
                pl.BlockSpec((C, 1), lambda b, n: (0, 0)),
                pl.BlockSpec((C, 1), lambda b, n: (0, 0)),
                pl.BlockSpec((O, C), lambda b, n: (0, 0)),
            ],
            out_specs=pl.BlockSpec((1, O, tn), lambda b, n: (b, 0, n)),
        ),
        compiler_params=pltpu.CompilerParams(
            dimension_semantics=("parallel", "parallel"),
            vmem_limit_bytes=_VMEM_LIMIT,
        ),
    )(x, g2, b2, wp)


# ---------------------------------------------------------------------------
# Kernel 2: channel attention core, all heads of one batch element per grid step.
#   softmax(normalize(q) @ normalize(k)^T * temperature) @ v   with q/k/v: (Hh, c, N)
# ---------------------------------------------------------------------------
def _channel_attention_kernel(q_ref, k_ref, v_ref, t_ref, o_ref):
    q = q_ref[...][0].astype(jnp.float32)                    # (Hh, c, N)
    k = k_ref[...][0].astype(jnp.float32)
    v = v_ref[...][0]                                        # (Hh, c, N) bf16
    t = t_ref[...].astype(jnp.float32)                       # (Hh, 1, 1)

    # torch.nn.functional.normalize(x, dim=-1): x / max(||x||_2, 1e-12)
    qn = q * lax.rsqrt(jnp.maximum(jnp.sum(q * q, axis=-1, keepdims=True), 1e-24))
    kn = k * lax.rsqrt(jnp.maximum(jnp.sum(k * k, axis=-1, keepdims=True), 1e-24))

    attn = jnp.einsum("hcn,hdn->hcd",
                      qn.astype(jnp.bfloat16), kn.astype(jnp.bfloat16),
                      preferred_element_type=jnp.float32) * t          # (Hh, c, c)
    attn = attn - jnp.max(attn, axis=-1, keepdims=True)
    p = jnp.exp(attn)
    p = p * pl.reciprocal(jnp.sum(p, axis=-1, keepdims=True), approx=True)
    out = jnp.einsum("hcd,hdn->hcn", p.astype(v.dtype), v,
                     preferred_element_type=jnp.float32)               # (Hh, c, N)
    o_ref[...] = out[None].astype(o_ref.dtype)


def channel_attention(q, k, v, temperature):
    """q, k, v: (B, heads, c, N); temperature: (heads, 1, 1)."""
    B, Hh, c, N = q.shape
    qc = q.astype(jnp.bfloat16)
    kc = k.astype(jnp.bfloat16)
    vc = v.astype(jnp.bfloat16)
    t = temperature.reshape(Hh, 1, 1).astype(jnp.float32)

    return pl.pallas_call(
        _channel_attention_kernel,
        out_shape=jax.ShapeDtypeStruct((B, Hh, c, N), q.dtype),
        grid_spec=pltpu.PrefetchScalarGridSpec(
            num_scalar_prefetch=0,
            grid=(B,),
            in_specs=[
                pl.BlockSpec((1, Hh, c, N), lambda b: (b, 0, 0, 0)),
                pl.BlockSpec((1, Hh, c, N), lambda b: (b, 0, 0, 0)),
                pl.BlockSpec((1, Hh, c, N), lambda b: (b, 0, 0, 0)),
                pl.BlockSpec((Hh, 1, 1), lambda b: (0, 0, 0)),
            ],
            out_specs=pl.BlockSpec((1, Hh, c, N), lambda b: (b, 0, 0, 0)),
        ),
        compiler_params=pltpu.CompilerParams(
            dimension_semantics=("parallel",),
            vmem_limit_bytes=_VMEM_LIMIT,
        ),
    )(qc, kc, vc, t)


# ---------------------------------------------------------------------------
# Model glue (3x3 convs stay in XLA; remaining 1x1 convs are plain matmuls)
# ---------------------------------------------------------------------------
def conv2d(x, w, b=None, *, padding=0, groups=1):
    out = lax.conv_general_dilated(
        x, w, window_strides=(1, 1),
        padding=((padding, padding), (padding, padding)),
        dimension_numbers=("NCHW", "OIHW", "NCHW"),
        feature_group_count=groups)
    if b is not None:
        out = out + b.reshape(1, -1, 1, 1)
    return out


def conv1x1(x, w, b=None):
    out = jnp.einsum("bchw,oc->bohw", x, w[:, :, 0, 0])
    if b is not None:
        out = out + b.reshape(1, -1, 1, 1)
    return out


def attention_forward(p, x):
    B, C, H, W = x.shape
    num_heads = C // 32                                       # module: dim // 32
    # fused LayerNorm(norm1) + qkv 1x1 projection (bias=False)
    qkv = layernorm_proj(x.reshape(B, C, H * W), p["norm1_w"], p["norm1_b"],
                         p["qkv_w"][:, :, 0, 0])
    qkv = conv2d(qkv.reshape(B, 3 * C, H, W), p["qkv_dw_w"], padding=1, groups=3 * C)
    q, k, v = jnp.split(qkv, 3, axis=1)
    to_heads = lambda t: t.reshape(B, num_heads, C // num_heads, H * W)
    out = channel_attention(to_heads(q), to_heads(k), to_heads(v), p["temperature"])
    out = out.reshape(B, C, H, W)
    return conv1x1(out, p["proj_w"])


def feedforward_forward(p, x):
    B, C, H, W = x.shape
    # fused LayerNorm(norm2) + project_in 1x1 (dim -> 2*hidden)
    h2 = layernorm_proj(x.reshape(B, C, H * W), p["norm2_w"], p["norm2_b"],
                        p["ffn_in_w"][:, :, 0, 0])
    ch = h2.shape[1]
    h2 = conv2d(h2.reshape(B, ch, H, W), p["ffn_dw_w"], padding=1, groups=ch)
    x1, x2 = jnp.split(h2, 2, axis=1)
    g = jax.nn.gelu(x1, approximate=False) * x2
    return conv1x1(g, p["ffn_out_w"])


def transformer_blocks_forward(params, feat):
    h = jax.nn.gelu(conv2d(feat, params["head_w"], params["head_b"], padding=1),
                    approximate=False)

    def block_step(x, blk):
        x = x + attention_forward(blk, x)
        x = x + feedforward_forward(blk, x)
        return x, None

    x, _ = lax.scan(block_step, h, params["blocks"])
    return h + x


def init_params(key, in_channels, dim=128, nb=8, ffn_expansion_factor=2.66):
    hidden = int(dim * ffn_expansion_factor)
    num_heads = dim // 32
    k_head, k_blocks = jax.random.split(key)

    def w_init(k, shape):
        fan_in = shape[1] * shape[2] * shape[3]
        return jax.random.normal(k, shape, jnp.float32) * (fan_in ** -0.5)

    def block_params(k):
        bk = jax.random.split(k, 6)
        return {
            "norm1_w": jnp.ones((dim,), jnp.float32),
            "norm1_b": jnp.zeros((dim,), jnp.float32),
            "norm2_w": jnp.ones((dim,), jnp.float32),
            "norm2_b": jnp.zeros((dim,), jnp.float32),
            "temperature": jnp.ones((num_heads, 1, 1), jnp.float32),
            "qkv_w": w_init(bk[0], (dim * 3, dim, 1, 1)),
            "qkv_dw_w": w_init(bk[1], (dim * 3, 1, 3, 3)),
            "proj_w": w_init(bk[2], (dim, dim, 1, 1)),
            "ffn_in_w": w_init(bk[3], (hidden * 2, dim, 1, 1)),
            "ffn_dw_w": w_init(bk[4], (hidden * 2, 1, 3, 3)),
            "ffn_out_w": w_init(bk[5], (dim, hidden, 1, 1)),
        }

    blocks = [block_params(jax.random.fold_in(k_blocks, i)) for i in range(nb)]
    stacked = jax.tree_util.tree_map(lambda *xs: jnp.stack(xs), *blocks)
    return {
        "head_w": w_init(k_head, (dim, in_channels, 3, 3)),
        "head_b": jnp.zeros((dim,), jnp.float32),
        "blocks": stacked,
    }


# ---------------------------------------------------------------------------
# Pure-JAX references for the Pallas kernels
# ---------------------------------------------------------------------------
def ln_proj_ref(x, gamma, beta, w_proj, with_bias=True):
    xf = x.astype(jnp.float32)                               # (B, C, N)
    mu = jnp.mean(xf, axis=1, keepdims=True)
    var = jnp.mean((xf - mu) ** 2, axis=1, keepdims=True)
    if with_bias:
        y = (xf - mu) / jnp.sqrt(var + EPS) * gamma[None, :, None] + beta[None, :, None]
    else:
        y = xf / jnp.sqrt(var + EPS) * gamma[None, :, None]
    out = jnp.einsum("oc,bcn->bon", w_proj.astype(jnp.bfloat16), y.astype(jnp.bfloat16),
                     preferred_element_type=jnp.float32)
    return out.astype(x.dtype)


def channel_attention_ref(q, k, v, temperature):
    qf = q.astype(jnp.float32)
    kf = k.astype(jnp.float32)
    vf = v.astype(jnp.float32)
    qn = qf / jnp.maximum(jnp.linalg.norm(qf, axis=-1, keepdims=True), 1e-12)
    kn = kf / jnp.maximum(jnp.linalg.norm(kf, axis=-1, keepdims=True), 1e-12)
    attn = jnp.einsum("bhcn,bhdn->bhcd", qn, kn) * temperature[None]
    attn = jax.nn.softmax(attn, axis=-1)
    return jnp.einsum("bhcd,bhdn->bhcn", attn, vf).astype(q.dtype)


if __name__ == "__main__":
    root = jax.random.PRNGKey(0)
    k_param, k_x, k_ln, k_lw, k_lb, k_wp, k_q, k_k, k_v, k_t = jax.random.split(root, 10)

    # --- Unit check 1: fused LayerNorm + 1x1 projection (multi-tile grid, ragged N) ---
    C, O = 128, 384
    xs = jax.random.normal(k_ln, (2, C, 300), jnp.float32)            # (B, C, N)
    lw = 1.0 + 0.1 * jax.random.normal(k_lw, (C,), jnp.float32)
    lb = 0.1 * jax.random.normal(k_lb, (C,), jnp.float32)
    wp = jax.random.normal(k_wp, (O, C), jnp.float32) * (C ** -0.5)
    out_wb = jax.block_until_ready(
        layernorm_proj(xs, lw, lb, wp, with_bias=True, block_n=128))  # 3 N-tiles, last ragged
    assert jnp.allclose(out_wb, ln_proj_ref(xs, lw, lb, wp, True), atol=5e-3, rtol=5e-3)
    out_bf = jax.block_until_ready(
        layernorm_proj(xs, lw, None, wp, with_bias=False, block_n=128))
    assert jnp.allclose(out_bf, ln_proj_ref(xs, lw, lb, wp, False), atol=5e-3, rtol=5e-3)

    # --- Unit check 2: heads-batched channel-attention kernel (bf16 MXU path) ---
    # pre-round q/k/v to bf16 so kernel and reference see identical inputs
    rnd = lambda t: t.astype(jnp.bfloat16).astype(jnp.float32)
    q = rnd(jax.random.normal(k_q, (2, 4, 32, 256), jnp.float32))
    k_ = rnd(jax.random.normal(k_k, (2, 4, 32, 256), jnp.float32))
    v = rnd(jax.random.normal(k_v, (2, 4, 32, 256), jnp.float32))
    temp = 1.0 + 0.1 * jax.random.normal(k_t, (4, 1, 1), jnp.float32)
    out_a = jax.block_until_ready(channel_attention(q, k_, v, temp))
    assert jnp.allclose(out_a, channel_attention_ref(q, k_, v, temp), atol=2e-2, rtol=2e-2)

    # --- Full TransformerBlocks forward: in_channels=4, dim=128, nb=8 ---
    B, Cin, H, W = 2, 4, 16, 16
    params = init_params(k_param, Cin, dim=128, nb=8)
    feat = jax.random.normal(k_x, (B, Cin, H, W), jnp.float32)
    y = jax.block_until_ready(jax.jit(transformer_blocks_forward)(params, feat))
    assert y.shape == (B, 128, H, W)
    assert bool(jnp.all(jnp.isfinite(y)))

    print("KERNEL_OK")
</pallas_src>

<mosaic_0001>
module attributes {stable_mosaic.version = 11 : i64} {
  func.func @_ln_proj_kernel(%arg0: i32, %arg1: i32, %arg2: memref<1x128x128xf32, #tpu.memory_space<vmem>>, %arg3: memref<128x1xf32, #tpu.memory_space<vmem>>, %arg4: memref<128x1xf32, #tpu.memory_space<vmem>>, %arg5: memref<384x128xbf16, #tpu.memory_space<vmem>>, %arg6: memref<1x384x128xf32, #tpu.memory_space<vmem>>) attributes {dimension_semantics = [#tpu.dimension_semantics<parallel>, #tpu.dimension_semantics<parallel>], iteration_bounds = array<i64: 2, 3>, scalar_prefetch = 0 : i64, scratch_operands = 0 : i64, tpu.core_type = #tpu.core_type<tc>, window_params = [{transform_indices = @transform_0, window_bounds = array<i64: 1, 128, 128>}, {pipeline_mode = #tpu.pipeline_mode<synchronous>, transform_indices = @transform_1, window_bounds = array<i64: 128, 1>}, {pipeline_mode = #tpu.pipeline_mode<synchronous>, transform_indices = @transform_2, window_bounds = array<i64: 128, 1>}, {pipeline_mode = #tpu.pipeline_mode<synchronous>, transform_indices = @transform_3, window_bounds = array<i64: 384, 128>}, {transform_indices = @transform_4, window_bounds = array<i64: 1, 384, 128>}]} {
    %c0 = arith.constant 0 : index
    %c0_0 = arith.constant 0 : index
    %c0_1 = arith.constant 0 : index
    %0 = vector.load %arg2[%c0, %c0_0, %c0_1] : memref<1x128x128xf32, #tpu.memory_space<vmem>>, vector<1x128x128xf32>
    %1 = vector.shape_cast %0 : vector<1x128x128xf32> to vector<128x128xf32>
    %cst = arith.constant dense<0.000000e+00> : vector<128xf32>
    %2 = vector.multi_reduction <add>, %1, %cst [0] : vector<128x128xf32> to vector<128xf32>
    %3 = vector.shape_cast %2 : vector<128xf32> to vector<1x128xf32>
    %cst_2 = arith.constant 7.812500e-03 : f32
    %4 = vector.broadcast %cst_2 : f32 to vector<1x128xf32>
    %5 = arith.mulf %3, %4 : vector<1x128xf32>
    %6 = arith.mulf %1, %1 : vector<128x128xf32>
    %cst_3 = arith.constant dense<0.000000e+00> : vector<128xf32>
    %7 = vector.multi_reduction <add>, %6, %cst_3 [0] : vector<128x128xf32> to vector<128xf32>
    %8 = vector.shape_cast %7 : vector<128xf32> to vector<1x128xf32>
    %cst_4 = arith.constant 7.812500e-03 : f32
    %9 = vector.broadcast %cst_4 : f32 to vector<1x128xf32>
    %10 = arith.mulf %8, %9 : vector<1x128xf32>
    %11 = arith.mulf %5, %5 : vector<1x128xf32>
    %12 = arith.subf %10, %11 : vector<1x128xf32>
    %cst_5 = arith.constant 9.99999974E-6 : f32
    %13 = vector.broadcast %cst_5 : f32 to vector<1x128xf32>
    %14 = arith.addf %12, %13 : vector<1x128xf32>
    %15 = math.rsqrt %14 : vector<1x128xf32>
    %c0_6 = arith.constant 0 : index
    %c0_7 = arith.constant 0 : index
    %16 = vector.load %arg3[%c0_6, %c0_7] : memref<128x1xf32, #tpu.memory_space<vmem>>, vector<128x1xf32>
    %17 = vector.broadcast %5 : vector<1x128xf32> to vector<128x128xf32>
    %18 = arith.subf %1, %17 : vector<128x128xf32>
    %19 = vector.broadcast %15 : vector<1x128xf32> to vector<128x128xf32>
    %20 = arith.mulf %18, %19 : vector<128x128xf32>
    %21 = vector.broadcast %16 : vector<128x1xf32> to vector<128x128xf32>
    %22 = arith.mulf %20, %21 : vector<128x128xf32>
    %c0_8 = arith.constant 0 : index
    %c0_9 = arith.constant 0 : index
    %23 = vector.load %arg4[%c0_8, %c0_9] : memref<128x1xf32, #tpu.memory_space<vmem>>, vector<128x1xf32>
    %24 = vector.broadcast %23 : vector<128x1xf32> to vector<128x128xf32>
    %25 = arith.addf %22, %24 : vector<128x128xf32>
    %c0_10 = arith.constant 0 : index
    %c0_11 = arith.constant 0 : index
    %26 = vector.load %arg5[%c0_10, %c0_11] : memref<384x128xbf16, #tpu.memory_space<vmem>>, vector<384x128xbf16>
    %27 = arith.truncf %25 : vector<128x128xf32> to vector<128x128xbf16>
    %cst_12 = arith.constant dense<0.000000e+00> : vector<384x128xf32>
    %28 = tpu.matmul %26, %27, %cst_12 {dimension_numbers = #tpu.dot_dimension_numbers<[1], [0], [0], [1], [0, 0, 1, 1], [], []>} : vector<384x128xbf16>, vector<128x128xbf16>, vector<384x128xf32> -> vector<384x128xf32>
    %29 = vector.shape_cast %28 : vector<384x128xf32> to vector<1x384x128xf32>
    %c0_13 = arith.constant 0 : index
    %c0_14 = arith.constant 0 : index
    %c0_15 = arith.constant 0 : index
    %30 = vector.load %arg6[%c0_13, %c0_14, %c0_15] : memref<1x384x128xf32, #tpu.memory_space<vmem>>, vector<1x384x128xf32>
    tpu.vector_store %arg6[%c0_13, %c0_14, %c0_15], %29 {strides = array<i32>} : memref<1x384x128xf32, #tpu.memory_space<vmem>>, vector<1x384x128xf32>,
    return
  }
  func.func @transform_0(%arg0: i32, %arg1: i32) -> (i32, i32, i32) {
    %c0_i32 = arith.constant 0 : i32
    %c0_i32_0 = arith.constant 0 : i32
    return %arg0, %c0_i32, %arg1 : i32, i32, i32
  }
  func.func @transform_1(%arg0: i32, %arg1: i32) -> (i32, i32) {
    %c0_i32 = arith.constant 0 : i32
    %c0_i32_0 = arith.constant 0 : i32
    %c0_i32_1 = arith.constant 0 : i32
    return %c0_i32, %c0_i32_0 : i32, i32
  }
  func.func @transform_2(%arg0: i32, %arg1: i32) -> (i32, i32) {
    %c0_i32 = arith.constant 0 : i32
    %c0_i32_0 = arith.constant 0 : i32
    %c0_i32_1 = arith.constant 0 : i32
    return %c0_i32, %c0_i32_0 : i32, i32
  }
  func.func @transform_3(%arg0: i32, %arg1: i32) -> (i32, i32) {
    %c0_i32 = arith.constant 0 : i32
    %c0_i32_0 = arith.constant 0 : i32
    %c0_i32_1 = arith.constant 0 : i32
    return %c0_i32, %c0_i32_0 : i32, i32
  }
  func.func @transform_4(%arg0: i32, %arg1: i32) -> (i32, i32, i32) {
    %c0_i32 = arith.constant 0 : i32
    %c0_i32_0 = arith.constant 0 : i32
    return %arg0, %c0_i32, %arg1 : i32, i32, i32
  }
}

</mosaic_0001>

<bundles_post_ra>
// kernel: tpu_custom_call.1
= control target key start
LH: loop header
LB: loop body
LE: loop exit
PB: predicated region body
PF: predicated region fallthrough
CT: control target
= control target key end

     0   :  { %9 = vsyncpa [#allocation4], 0  ;;  %s1714_s15 = smov 0   ;;  %s1716_s16 = smov 0   ;;  %s2255_s0 = inlined_call_operand.vmem [shape: f32[2,128,300], index: 0, kind: input, shape index: {}]   ;;  %s2256_s1 = inlined_call_operand.vmem [shape: f32[128,1], index: 1, kind: input, shape index: {}]   ;;  %s2257_s2 = inlined_call_operand.vmem [shape: f32[128,1], index: 2, kind: input, shape index: {}]   ;;  %s2258_s3 = inlined_call_operand.hbm [shape: bf16[384,128], index: 3, kind: input, shape index: {}]   ;;  %s2259_s4 = inlined_call_operand.vmem [shape: f32[2,384,300], index: 4, kind: output, shape index: {}]  }
   0x1   :  { %s1718_s17 = smov 0   ;;  %s1720_s18 = smov 0  }
   0x2   :  { %s1722_s19 = smov 0   ;;  %s1724_s20 = smov 0  }
   0x3   :  { %s1726_s21 = smov 0  }
   0x4 LB: > { %s1360_s22 = sadd.s32 4294967295, %s1683_s21   ;;  %s24_s23 = sadd.s32 1, %s1675_s19  ;;  %s1683_s21 = sphi %s1726_s21, %s15_s21   ;;  %s1679_s20 = sphi %s1724_s20, %s2269_s20   ;;  %s1675_s19 = sphi %s1722_s19, %s2268_s19   ;;  %s1671_s18 = sphi %s1720_s18, %s2267_s18   ;;  %s1667_s17 = sphi %s1718_s17, %s2266_s17   ;;  %s1663_s16 = sphi %s1716_s16, %s2265_s16   ;;  %s1659_s15 = sphi %s1714_s15, %s2264_s15  }
   0x5   : > { %p25_p0 = scmp.ge.s32.totalorder %s24_s23, 3  ;;  %s27_s24 = sadd.s32 1, %s1679_s20 }
   0x6   : > { %s36_s25 = sadd.s32 1, %s1663_s16  ;;  %p43_p1 = scmp.ne.s32.totalorder %s1663_s16, %s1659_s15 }
   0x7   : > { %s2271_s23 = smov (%p25_p0, %s24_s23), 0  ;;  %s2273_s24 = smov (!%p25_p0, %s27_s24), %s1679_s20 }
   0x8   : > { %s32_s26 = ssub.s32 %s1675_s19, %s2271_s23  ;;  %p44_p2 = scmp.eq.s32.totalorder %s1683_s21, 0 }
   0x9   : > { %p29_p3 = scmp.ge.s32.totalorder %s2273_s24, 2  ;;  %p138_p4 = scmp.eq.s32.totalorder %s1360_s22, 5 }
   0xa   : > { %p1761_p5 = por %p44_p2, %p43_p1  ;;  %p1362_p6 = scmp.ge.s32.totalorder %s1683_s21, 1 }
   0xb   : > { %s2275_s24 = smov (%p29_p3, %s2273_s24), 0  ;;  %p1768_p7 = por %p138_p4, %p43_p1 }
   0xc   : > { %p151_p8 = scmp.lt.s32.totalorder %s1683_s21, 7  ;;  %s31_s29 = ssub.s32 %s1679_s20, %s2275_s24 }
   0xd   : > { %s33_s30 = sor.u32 %s32_s26, %s31_s29  ;;  %p1779_p11 = scmp.eq.s32.totalorder %s1360_s22, 0 }
   0xe   : > { %p1775_p9 = pnand %p1362_p6, %p151_p8  ;;  %p34_p10 = scmp.eq.s32.totalorder %s33_s30, 0 }
   0xf   : > { %s168_s9 = sshll.u32 %s2258_s3, 4  ;;  %s1685_s11 = smov [#allocation3]   ;;  %s169_s9 = int_to_ptr.hbm [resolvable:$true] %s168_s9 }
  0x10   : > { %p1524_p12 = pneg %p1775_p9  ;;  %s170_s12 = sshll.u32 %s1685_s11, 4  ;;  %s171_s12 = int_to_ptr.vmem [resolvable:$true] %s170_s12 }
  0x11   : > { %s1789_s10 = scalar_select %p34_p10, %s1663_s16, %s36_s25  }
  0x12   : > { %p1525_p13 = pnand %p1779_p11, %p1524_p12  ;;  %s1686_s13 = smov 64  }
  0x13   : > { %s1687_s14 = smov 4   ;;  %p1364_p0 = scmp.ge.s32.totalorder %s1683_s21, 6 }
  0x14   : > { %1527 = dma.hbm_to_vmem [thread:$0]  (!%p1525_p13), %s169_s9, 3072, %s171_s12, [#allocation4], %s1686_s13, %s1686_s13, %s1687_s14  }
  0x15   : > { %180 = sbr.rel (%p1364_p0) target bundleno = 49 (0x31), region = 28 }
  0x1a   : > { %183 = sbr.rel (!%p1761_p5) target bundleno = 49 (0x31), region = 32  ;;  %s185_s22 = sand.u32 (%p1761_p5), 1, %s1663_s16  }
  0x1b   : > { %s1517_s25 = smul.u32 (%p1761_p5), 48, %s1679_s20  ;;  %s1365_s26 = sshll.u32 (%p1761_p5), %s185_s22, 7 }
  0x1c   : > { %s187_s27 = scalar_lea.vmem (%p1761_p5), [#allocation2], %s1365_s26 }
  0x1d   : > { %s189_s29 = sadd.s32 (%p1761_p5), %s1675_s19, %s1517_s25 }
  0x1e   : > { %s1366_s30 = sshll.u32 (%p1761_p5), %s189_s29, 3 }
  0x1f   : > { %s1802_s11 = scalar_lea.vmem %s2255_s0, %s1366_s30 }
  0x20   : > { %v250_v0 = vld [vmem:[%s1802_s11] sm:$0xff]  ;;  %v252_v1 = vld [vmem:[%s1802_s11 + $0x18] sm:$0xff]  ;;  %v254_v2 = vld [vmem:[%s1802_s11 + $0x30] sm:$0xff] }
  0x21   : > { %251 = vst [vmem:[%s187_s27] sm:$0xff] %v250_v0  ;;  %v256_v3 = vld [vmem:[%s1802_s11 + $0x48] sm:$0xff]  ;;  %v258_v4 = vld [vmem:[%s1802_s11 + $0x60] sm:$0xff]  ;;  %v260_v5 = vld [vmem:[%s1802_s11 + $0x78] sm:$0xff] }
  0x22   : > { %253 = vst [vmem:[%s187_s27 + $0x8] sm:$0xff] %v252_v1  ;;  %v262_v6 = vld [vmem:[%s1802_s11 + $0x90] sm:$0xff]  ;;  %v264_v7 = vld [vmem:[%s1802_s11 + $0xa8] sm:$0xff]  ;;  %v266_v8 = vld [vmem:[%s1802_s11 + $0xc0] sm:$0xff] }
  0x23   : > { %255 = vst [vmem:[%s187_s27 + $0x10] sm:$0xff] %v254_v2  ;;  %v268_v9 = vld [vmem:[%s1802_s11 + $0xd8] sm:$0xff]  ;;  %v270_v10 = vld [vmem:[%s1802_s11 + $0xf0] sm:$0xff]  ;;  %v272_v11 = vld [vmem:[%s1802_s11 + $0x108] sm:$0xff] }
  0x24   : > { %257 = vst [vmem:[%s187_s27 + $0x18] sm:$0xff] %v256_v3  ;;  %v274_v12 = vld [vmem:[%s1802_s11 + $0x120] sm:$0xff]  ;;  %v276_v13 = vld [vmem:[%s1802_s11 + $0x138] sm:$0xff]  ;;  %v278_v14 = vld [vmem:[%s1802_s11 + $0x150] sm:$0xff] }
  0x25   : > { %259 = vst [vmem:[%s187_s27 + $0x20] sm:$0xff] %v258_v4  ;;  %v280_v15 = vld [vmem:[%s1802_s11 + $0x168] sm:$0xff] }
  0x26   : > { %261 = vst [vmem:[%s187_s27 + $0x28] sm:$0xff] %v260_v5 }
  0x27   : > { %263 = vst [vmem:[%s187_s27 + $0x30] sm:$0xff] %v262_v6 }
  0x28   : > { %265 = vst [vmem:[%s187_s27 + $0x38] sm:$0xff] %v264_v7 }
  0x29   : > { %267 = vst [vmem:[%s187_s27 + $0x40] sm:$0xff] %v266_v8 }
  0x2a   : > { %269 = vst [vmem:[%s187_s27 + $0x48] sm:$0xff] %v268_v9 }
  0x2b   : > { %271 = vst [vmem:[%s187_s27 + $0x50] sm:$0xff] %v270_v10 }
  0x2c   : > { %273 = vst [vmem:[%s187_s27 + $0x58] sm:$0xff] %v272_v11 }
  0x2d   : > { %275 = vst [vmem:[%s187_s27 + $0x60] sm:$0xff] %v274_v12 }
  0x2e   : > { %277 = vst [vmem:[%s187_s27 + $0x68] sm:$0xff] %v276_v13 }
  0x2f   : > { %279 = vst [vmem:[%s187_s27 + $0x70] sm:$0xff] %v278_v14 }
  0x30   : > { %281 = vst [vmem:[%s187_s27 + $0x78] sm:$0xff] %v280_v15 }
  0x31 PF: > { %290 = sbr.rel (%p1775_p9) target bundleno = 492 (0x1ec), region = 70  ;;  %s293_s9 = sand.u32 (!%p1775_p9), 1, %s1659_s15  }
  0x32   : > { %s1368_s12 = sshll.u32 (!%p1775_p9), %s293_s9, 7 }
  0x33   : > { %s1825_s13 = scalar_lea.vmem (!%p1775_p9), [#allocation2], %s1368_s12 }
  0x36   : > { %1654 = dma.done.wait (%p1779_p11), [#allocation4], 3072  }
  0x37   : > { %1656 = vsyncadd (%p1779_p11), [#allocation4], 4294964224  ;;  %v1688_v16 = vmov 0   ;;  %v569_v17 = vld [vmem:[%s2257_s2 + $0x70] sm:$0xff]  ;;  %v423_v19 = vld [vmem:[%s2256_s1 + $0x60] sm:$0xff]  ;;  %s1518_s11 = smul.u32 384, %s293_s9 }
  0x38   : > { %1592 = vset.pattern.permute.xlu2 %v1688_v16  ;;  %1591 = vset.pattern.permute.xlu1 %v1688_v16  ;;  %v425_v18 = vld [vmem:[%s2256_s1 + $0x70] sm:$0xff]  ;;  %v570_v20 = vld [vmem:[%s2257_s2 + $0x78] sm:$0xff]  ;;  %v424_v22 = vld [vmem:[%s2256_s1 + $0x68] sm:$0xff]  ;;  %s1519_s15 = smul.u32 (%p1768_p7), 144, %s1671_s18 }
  0x39   : > { %1590 = vset.pattern.permute.xlu0 %v1688_v16  ;;  %643 = vperm.xlu1 %1591, %v569_v17   ;;  %v426_v21 = vld [vmem:[%s2256_s1 + $0x78] sm:$0xff]  ;;  %v568_v23 = vld [vmem:[%s2257_s2 + $0x68] sm:$0xff]  ;;  %v567_v24 = vld [vmem:[%s2257_s2 + $0x60] sm:$0xff]  ;;  %s2079_s27 = scalar_lea.vmem [#allocation5], %s1518_s11 }
  0x3a   : > { %531 = vperm.xlu0 %1590, %v425_v18   ;;  %521 = vperm.xlu2 %1592, %v423_v19   ;;  %v1856_v25 = vld [vmem:[%s1825_s13] sm:$0xff]  ;;  %v1859_v26 = vld [vmem:[%s1825_s13 + $0x8] sm:$0xff]  ;;  %v421_v27 = vld [vmem:[%s2256_s1 + $0x50] sm:$0xff]  ;;  %s1052_s9 = sadd.s32 (%p1768_p7), %s1667_s17, %s1519_s15 }
  0x3b   : > { %v338_v28 = vadd.f32 %v1859_v26, %v1856_v25  ;;  %v360_v29 = vmul.f32 %v1856_v25, %v1856_v25  ;;  %v361_v30 = vmul.f32 %v1859_v26, %v1859_v26  ;;  %v1871_v31 = vld [vmem:[%s1825_s13 + $0x10] sm:$0xff]  ;;  %v1877_v35 = vld [vmem:[%s1825_s13 + $0x18] sm:$0xff]  ;;  %v1883_v39 = vld [vmem:[%s1825_s13 + $0x20] sm:$0xff]  ;;  %s1466_s12 = sshll.u32 (%p1768_p7), %s1052_s9, 3 }
  0x3c   : > { %v362_v33 = vmul.f32 %v1871_v31, %v1871_v31  ;;  %v363_v37 = vmul.f32 %v1877_v35, %v1877_v35  ;;  %v364_v41 = vmul.f32 %v1883_v39, %v1883_v39  ;;  %v565_v43 = vld [vmem:[%s2257_s2 + $0x50] sm:$0xff]  ;;  %v422_v44 = vld [vmem:[%s2256_s1 + $0x58] sm:$0xff]  ;;  %v1895_v45 = vld [vmem:[%s1825_s13 + $0x28] sm:$0xff]  ;;  %s2138_s28 = scalar_lea.vmem (%p1768_p7), %s2259_s4, %s1466_s12 }
  0x3d   : > { %v339_v32 = vadd.f32 %v338_v28, %v1871_v31  ;;  %v376_v34 = vadd.f32 %v361_v30, %v360_v29  ;;  %v566_v46 = vld [vmem:[%s2257_s2 + $0x58] sm:$0xff]  ;;  %v365_v48 = vmul.f32 %v1895_v45, %v1895_v45  ;;  %v1904_v50 = vld [vmem:[%s1825_s13 + $0x30] sm:$0xff]  ;;  %v1916_v58 = vld [vmem:[%s1825_s13 + $0x40] sm:$0xff] }
  0x3e   : > { %v366_v52 = vmul.f32 %v1904_v50, %v1904_v50  ;;  %v1910_v54 = vld [vmem:[%s1825_s13 + $0x38] sm:$0xff]  ;;  %v368_v60 = vmul.f32 %v1916_v58, %v1916_v58  ;;  %v420_v62 = vld [vmem:[%s2256_s1 + $0x48] sm:$0xff]  ;;  %v419_v63 = vld [vmem:[%s2256_s1 + $0x40] sm:$0xff] }
  0x3f   : > { %v340_v36 = vadd.f32 %v339_v32, %v1877_v35  ;;  %v377_v38 = vadd.f32 %v376_v34, %v362_v33  ;;  %v367_v56 = vmul.f32 %v1910_v54, %v1910_v54  ;;  %v1928_v0 = vld [vmem:[%s1825_s13 + $0x48] sm:$0xff]  ;;  %v563_v1 = vld [vmem:[%s2257_s2 + $0x40] sm:$0xff]  ;;  %v1937_v5 = vld [vmem:[%s1825_s13 + $0x50] sm:$0xff] }
  0x40   : > { %v369_v3 = vmul.f32 %v1928_v0, %v1928_v0  ;;  %v370_v7 = vmul.f32 %v1937_v5, %v1937_v5  ;;  %v1943_v9 = vld [vmem:[%s1825_s13 + $0x58] sm:$0xff]  ;;  %v1949_v13 = vld [vmem:[%s1825_s13 + $0x60] sm:$0xff]  ;;  %v564_v17 = vld [vmem:[%s2257_s2 + $0x48] sm:$0xff] }
  0x41   : > { %648 = vperm.xlu1 %1591, %v570_v20   ;;  %v341_v40 = vadd.f32 %v340_v36, %v1883_v39  ;;  %v378_v42 = vadd.f32 %v377_v38, %v363_v37  ;;  %v371_v11 = vmul.f32 %v1943_v9, %v1943_v9  ;;  %v372_v15 = vmul.f32 %v1949_v13, %v1949_v13  ;;  %v417_v18 = vld [vmem:[%s2256_s1 + $0x30] sm:$0xff]  ;;  %v1961_v19 = vld [vmem:[%s1825_s13 + $0x68] sm:$0xff]  ;;  %v418_v20 = vld [vmem:[%s2256_s1 + $0x38] sm:$0xff] }
  0x42   : > { %536 = vperm.xlu0 %1590, %v426_v21   ;;  %526 = vperm.xlu2 %1592, %v424_v22   ;;  %v373_v22 = vmul.f32 %v1961_v19, %v1961_v19  ;;  %v1976_v30 = vld [vmem:[%s1825_s13 + $0x78] sm:$0xff]  ;;  %v561_v36 = vld [vmem:[%s2257_s2 + $0x30] sm:$0xff] }
  0x43   : > { %v342_v47 = vadd.f32 %v341_v40, %v1895_v45  ;;  %v379_v49 = vadd.f32 %v378_v42, %v364_v41  ;;  %v375_v33 = vmul.f32 %v1976_v30, %v1976_v30  ;;  %v562_v37 = vld [vmem:[%s2257_s2 + $0x38] sm:$0xff]  ;;  %v415_v41 = vld [vmem:[%s2256_s1 + $0x20] sm:$0xff] }
  0x45   : > { %v343_v51 = vadd.f32 %v342_v47, %v1904_v50  ;;  %v380_v53 = vadd.f32 %v379_v49, %v365_v48  ;;  %v560_v49 = vld [vmem:[%s2257_s2 + $0x28] sm:$0xff] }
  0x47   : > { %v344_v55 = vadd.f32 %v343_v51, %v1910_v54  ;;  %v381_v57 = vadd.f32 %v380_v53, %v366_v52  ;;  %v414_v53 = vld [vmem:[%s2256_s1 + $0x18] sm:$0xff] }
  0x49   : > { %638 = vperm.xlu1 %1591, %v568_v23   ;;  %v345_v59 = vadd.f32 %v344_v55, %v1916_v58  ;;  %v382_v61 = vadd.f32 %v381_v57, %v367_v56  ;;  %v413_v55 = vld [vmem:[%s2256_s1 + $0x10] sm:$0xff] }
  0x4a   : > { %633 = vperm.xlu0 %1590, %v567_v24   ;;  %511 = vperm.xlu2 %1592, %v421_v27   ;;  %v1970_v24 = vld [vmem:[%s1825_s13 + $0x70] sm:$0xff] }
  0x4b   : > { %v346_v2 = vadd.f32 %v345_v59, %v1928_v0  ;;  %v383_v4 = vadd.f32 %v382_v61, %v368_v60  ;;  %v374_v28 = vmul.f32 %v1970_v24, %v1970_v24  ;;  %v557_v59 = vld [vmem:[%s2257_s2 + $0x10] sm:$0xff] }
  0x4d   : > { %v347_v6 = vadd.f32 %v346_v2, %v1937_v5  ;;  %v384_v8 = vadd.f32 %v383_v4, %v369_v3  ;;  %v412_v3 = vld [vmem:[%s2256_s1 + $0x8] sm:$0xff] }
  0x4f   : > { %v348_v10 = vadd.f32 %v347_v6, %v1943_v9  ;;  %v385_v12 = vadd.f32 %v384_v8, %v370_v7  ;;  %v555_v7 = vld [vmem:[%s2257_s2] sm:$0xff]  ;;  %v556_v8 = vld [vmem:[%s2257_s2 + $0x8] sm:$0xff] }
  0x51   : > { %623 = vperm.xlu1 %1591, %v565_v43   ;;  %v349_v14 = vadd.f32 %v348_v10, %v1949_v13  ;;  %v386_v16 = vadd.f32 %v385_v12, %v371_v11 }
  0x52   : > { %516 = vperm.xlu0 %1590, %v422_v44   ;;  %628 = vperm.xlu2 %1592, %v566_v46   ;;  %v559_v44 = vld [vmem:[%s2257_s2 + $0x20] sm:$0xff]  ;;  %v416_v46 = vld [vmem:[%s2256_s1 + $0x28] sm:$0xff] }
  0x53   : > { %v350_v21 = vadd.f32 %v349_v14, %v1961_v19  ;;  %v387_v23 = vadd.f32 %v386_v16, %v372_v15 }
  0x55   : > { %v351_v27 = vadd.f32 %v350_v21, %v1970_v24  ;;  %v388_v29 = vadd.f32 %v387_v23, %v373_v22 }
  0x57   : > { %v352_v32 = vadd.f32 %v351_v27, %v1976_v30  ;;  %v389_v34 = vadd.f32 %v388_v29, %v374_v28 }
  0x59   : > { %506 = vperm.xlu1 %1591, %v420_v62   ;;  %v353_v38 = vrot.slane %v352_v32, 4  ;;  %v390_v40 = vadd.f32 %v389_v34, %v375_v33  ;;  %v558_v62 = vld [vmem:[%s2257_s2 + $0x18] sm:$0xff] }
  0x5a   : > { %501 = vperm.xlu0 %1590, %v419_v63   ;;  %613 = vperm.xlu2 %1592, %v563_v1   ;;  %v411_v63 = vld [vmem:[%s2256_s1] sm:$0xff] }
  0x5b   : > { %v354_v42 = vadd.f32 %v353_v38, %v352_v32  ;;  %v391_v43 = vrot.slane %v390_v40, 4 }
  0x5d   : > { %v355_v47 = vrot.slane %v354_v42, 2  ;;  %v392_v48 = vadd.f32 %v391_v43, %v390_v40 }
  0x5f   : > { %v356_v51 = vadd.f32 %v355_v47, %v354_v42  ;;  %v393_v52 = vrot.slane %v392_v48, 2 }
  0x61   : > { %491 = vperm.xlu1 %1591, %v417_v18   ;;  %v357_v56 = vrot.slane %v356_v51, 1  ;;  %v394_v57 = vadd.f32 %v393_v52, %v392_v48 }
  0x62   : > { %618 = vperm.xlu0 %1590, %v564_v17   ;;  %496 = vperm.xlu2 %1592, %v418_v20  }
  0x63   : > { %v358_v60 = vadd.f32 %v357_v56, %v356_v51  ;;  %v395_v61 = vrot.slane %v394_v57, 1 }
  0x65   : > { %v2014_v1 = vmul.f32 0.0078125, %v358_v60  ;;  %v396_v2 = vadd.f32 %v395_v61, %v394_v57 }
  0x67   : > { %v397_v4 = vmul.f32 0.0078125, %v396_v2  ;;  %v398_v6 = vmul.f32 %v2014_v1, %v2014_v1  ;;  %v441_v22 = vsub.f32 %v1970_v24, %v2014_v1  ;;  %v442_v29 = vsub.f32 %v1976_v30, %v2014_v1 }
  0x68   : > { %v437_v51 = vsub.f32 %v1937_v5, %v2014_v1 }
  0x69   : > { %608 = vperm.xlu1 %1591, %v562_v37   ;;  %v399_v10 = vsub.f32 %v397_v4, %v398_v6  ;;  %v440_v37 = vsub.f32 %v1961_v19, %v2014_v1  ;;  %v436_v6 = vsub.f32 %v1928_v0, %v2014_v1 }
  0x6a   : > { %603 = vperm.xlu0 %1590, %v561_v36   ;;  %481 = vperm.xlu2 %1592, %v415_v41   ;;  %v439_v36 = vsub.f32 %v1949_v13, %v2014_v1 }
  0x6b   : > { %v400_v11 = vadd.f32 1e-05, %v399_v10 }
  0x6d   : > { %1593 = vrsqrt.f32 %v400_v11  ;;  %vm407_vm0 = vweird.f32 %v400_v11 }
  0x71   : > { %593 = vperm.xlu1 %1591, %v559_v44  }
  0x72   : > { %486 = vperm.xlu0 %1590, %v416_v46   ;;  %598 = vperm.xlu2 %1592, %v560_v49  }
  0x73   : > { %v1594_v12 = vpop.eup %1593 }
  0x74   : > { %v402_v14 = vmul.f32 %v1594_v12, %v400_v11  ;;  %vm408_vm1 = vweird.f32 %v1594_v12 }
  0x75   : > { %vm409_vm2 = vmor %vm407_vm0, %vm408_vm1 }
  0x76   : > { %v403_v15 = vmul.f32 %v1594_v12, %v402_v14 }
  0x78   : > { %v404_v17 = vmul.f32 0.5, %v403_v15  ;;  %v434_v15 = vsub.f32 %v1910_v54, %v2014_v1 }
  0x79   : > { %476 = vperm.xlu1 %1591, %v414_v53  }
  0x7a   : > { %471 = vperm.xlu0 %1590, %v413_v55   ;;  %583 = vperm.xlu2 %1592, %v557_v59   ;;  %v405_v18 = vsub.f32 1.5, %v404_v17  ;;  %v438_v55 = vsub.f32 %v1943_v9, %v2014_v1  ;;  %v435_v9 = vsub.f32 %v1916_v58, %v2014_v1  ;;  %v433_v58 = vsub.f32 %v1904_v50, %v2014_v1 }
  0x7b   : > { %v431_v50 = vsub.f32 %v1883_v39, %v2014_v1 }
  0x7c   : > { %v406_v21 = vmul.f32 %v1594_v12, %v405_v18 }
  0x7e   : > { %v2029_v23 = vsel %vm409_vm2, %v1594_v12, %v406_v21 }
  0x7f   : > { %v457_v32 = vmul.f32 %v441_v22, %v2029_v23  ;;  %v458_v34 = vmul.f32 %v442_v29, %v2029_v23  ;;  %v455_v42 = vmul.f32 %v439_v36, %v2029_v23  ;;  %v456_v43 = vmul.f32 %v440_v37, %v2029_v23 }
  0x80   : > { %v453_v57 = vmul.f32 %v437_v51, %v2029_v23  ;;  %v454_v59 = vmul.f32 %v438_v55, %v2029_v23  ;;  %v451_v10 = vmul.f32 %v435_v9, %v2029_v23  ;;  %v452_v12 = vmul.f32 %v436_v6, %v2029_v23  ;;  %v1469_v6 = vld [vmem:[#allocation3] sm:$0xff] }
  0x81   : > { %461 = vperm.xlu1 %1591, %v411_v63   ;;  %v450_v21 = vmul.f32 %v434_v15, %v2029_v23  ;;  %v432_v37 = vsub.f32 %v1895_v45, %v2014_v1  ;;  %v429_v45 = vsub.f32 %v1871_v31, %v2014_v1  ;;  %v428_v55 = vsub.f32 %v1859_v26, %v2014_v1  ;;  %v1471_v15 = vld [vmem:[#allocation3 + $0x10] sm:$0xff] }
  0x82   : > { %588 = vperm.xlu0 %1590, %v558_v62   ;;  %466 = vperm.xlu2 %1592, %v412_v3   ;;  %v427_v31 = vsub.f32 %v1856_v25, %v2014_v1 }
  0x89   : > { %578 = vperm.xlu1 %1591, %v556_v8  }
  0x8a   : > { %573 = vperm.xlu0 %1590, %v555_v7  }
  0x94   : > { %v522_v16 = vpop.permute.xlu2 %521 }
  0x95   : > { %v551_v47 = vmul.f32 %v522_v16, %v455_v42 }
  0x9c   : > { %v527_v20 = vpop.permute.xlu2 %526 }
  0x9d   : > { %v552_v48 = vmul.f32 %v527_v20, %v456_v43 }
  0xa4   : > { %v512_v33 = vpop.permute.xlu2 %511 }
  0xa5   : > { %v549_v62 = vmul.f32 %v512_v33, %v453_v57 }
  0xab   : > { %v644_v27 = vpop.permute.xlu1 %643 }
  0xac   : > { %v532_v28 = vpop.permute.xlu0 %531  ;;  %v629_v49 = vpop.permute.xlu2 %628 }
  0xad   : > { %v553_v38 = vmul.f32 %v532_v28, %v457_v32 }
  0xaf   : > { %v665_v30 = vadd.f32 %v644_v27, %v553_v38  ;;  %v449_v27 = vmul.f32 %v433_v58, %v2029_v23  ;;  %v1483_v58 = vld [vmem:[#allocation3 + $0x70] sm:$0xff] }
  0xb3   : > { %v649_v24 = vpop.permute.xlu1 %648 }
  0xb4   : > { %v537_v40 = vpop.permute.xlu0 %536  ;;  %v614_v63 = vpop.permute.xlu2 %613 }
  0xb5   : > { %v554_v41 = vmul.f32 %v537_v40, %v458_v34  ;;  %v448_v40 = vmul.f32 %v432_v37, %v2029_v23 }
  0xb7   : > { %v666_v44 = vadd.f32 %v649_v24, %v554_v41  ;;  %v447_v24 = vmul.f32 %v431_v50, %v2029_v23  ;;  %v1492_v50 = vld [vmem:[#allocation3 + $0xb8] sm:$0xff] }
  0xb9   : > { %v722_v46 = vpack.c.bf16 %v666_v44, %v665_v30 }
  0xbb   : > { %867 = vmatpush.bf16.msra.mxu0 %v722_v46  ;;  %1493 = vmatpush.bf16.msra.mxu1 %v722_v46  ;;  %v639_v13 = vpop.permute.xlu1 %638 }
  0xbc   : > { %1494 = vmatpush.bf16.msra.mxu2 %v722_v46  ;;  %1495 = vmatpush.bf16.msra.mxu3 %v722_v46  ;;  %v634_v19 = vpop.permute.xlu0 %633  ;;  %v664_v52 = vadd.f32 %v639_v13, %v552_v48  ;;  %v497_v11 = vpop.permute.xlu2 %496  ;;  %v430_v48 = vsub.f32 %v1877_v35, %v2014_v1 }
  0xbd   : > { %v663_v53 = vadd.f32 %v634_v19, %v551_v47  ;;  %v546_v29 = vmul.f32 %v497_v11, %v450_v21  ;;  %v445_v19 = vmul.f32 %v429_v45, %v2029_v23  ;;  %v1476_v11 = vld [vmem:[#allocation3 + $0x38] sm:$0xff]  ;;  %v1490_v21 = vld [vmem:[#allocation3 + $0xa8] sm:$0xff] }
  0xbf   : > { %v721_v56 = vpack.c.bf16 %v664_v52, %v663_v53  ;;  %v446_v52 = vmul.f32 %v430_v48, %v2029_v23 }
  0xc1   : > { %868 = vmatpush.bf16.msra.mxu0 %v721_v56  ;;  %1496 = vmatpush.bf16.msra.mxu1 %v721_v56 }
  0xc2   : > { %1497 = vmatpush.bf16.msra.mxu2 %v721_v56  ;;  %1498 = vmatpush.bf16.msra.mxu3 %v721_v56 }
  0xc3   : > { %v624_v60 = vpop.permute.xlu1 %623 }
  0xc4   : > { %v517_v61 = vpop.permute.xlu0 %516  ;;  %v661_v5 = vadd.f32 %v624_v60, %v549_v62  ;;  %v482_v28 = vpop.permute.xlu2 %481 }
  0xc5   : > { %v550_v2 = vmul.f32 %v517_v61, %v454_v59  ;;  %v543_v30 = vmul.f32 %v482_v28, %v447_v24  ;;  %v444_v61 = vmul.f32 %v428_v55, %v2029_v23  ;;  %v1485_v28 = vld [vmem:[#allocation3 + $0x80] sm:$0xff] }
  0xc7   : > { %v662_v3 = vadd.f32 %v629_v49, %v550_v2 }
  0xc9   : > { %v720_v4 = vpack.c.bf16 %v662_v3, %v661_v5 }
  0xcb   : > { %869 = vmatpush.bf16.msra.mxu0 %v720_v4  ;;  %1499 = vmatpush.bf16.msra.mxu1 %v720_v4  ;;  %v507_v7 = vpop.permute.xlu1 %506 }
  0xcc   : > { %1500 = vmatpush.bf16.msra.mxu2 %v720_v4  ;;  %1501 = vmatpush.bf16.msra.mxu3 %v720_v4  ;;  %v502_v8 = vpop.permute.xlu0 %501  ;;  %v548_v16 = vmul.f32 %v507_v7, %v452_v12  ;;  %v599_v41 = vpop.permute.xlu2 %598  ;;  %v1475_v7 = vld [vmem:[#allocation3 + $0x30] sm:$0xff]  ;;  %v1482_v12 = vld [vmem:[#allocation3 + $0x68] sm:$0xff] }
  0xcd   : > { %v547_v14 = vmul.f32 %v502_v8, %v451_v10  ;;  %v1481_v8 = vld [vmem:[#allocation3 + $0x60] sm:$0xff]  ;;  %v1487_v10 = vld [vmem:[#allocation3 + $0x90] sm:$0xff] }
  0xcf   : > { %v659_v0 = vadd.f32 %v614_v63, %v547_v14  ;;  %v443_v63 = vmul.f32 %v427_v31, %v2029_v23  ;;  %v1470_v23 = vld [vmem:[#allocation3 + $0x8] sm:$0xff]  ;;  %v1488_v14 = vld [vmem:[#allocation3 + $0x98] sm:$0xff] }
  0xd3   : > { %v492_v18 = vpop.permute.xlu1 %491 }
  0xd4   : > { %v619_v17 = vpop.permute.xlu0 %618  ;;  %v545_v54 = vmul.f32 %v492_v18, %v449_v27  ;;  %v584_v51 = vpop.permute.xlu2 %583  ;;  %v1472_v18 = vld [vmem:[#allocation3 + $0x18] sm:$0xff]  ;;  %v1479_v27 = vld [vmem:[#allocation3 + $0x50] sm:$0xff] }
  0xd5   : > { %v660_v20 = vadd.f32 %v619_v17, %v548_v16  ;;  %v1477_v16 = vld [vmem:[#allocation3 + $0x40] sm:$0xff] }
  0xd6   : > { %v1489_v17 = vld [vmem:[#allocation3 + $0xa0] sm:$0xff] }
  0xd7   : > { %v719_v22 = vpack.c.bf16 %v660_v20, %v659_v0  ;;  %v1478_v0 = vld [vmem:[#allocation3 + $0x48] sm:$0xff]  ;;  %v1484_v20 = vld [vmem:[#allocation3 + $0x78] sm:$0xff] }
  0xd9   : > { %870 = vmatpush.bf16.msra.mxu0 %v719_v22  ;;  %1502 = vmatpush.bf16.msra.mxu1 %v719_v22 }
  0xda   : > { %1503 = vmatpush.bf16.msra.mxu2 %v719_v22  ;;  %1504 = vmatpush.bf16.msra.mxu3 %v719_v22  ;;  %v1473_v22 = vld [vmem:[#allocation3 + $0x20] sm:$0xff] }
  0xdb   : > { %v609_v33 = vpop.permute.xlu1 %608 }
  0xdc   : > { %v604_v32 = vpop.permute.xlu0 %603  ;;  %v658_v36 = vadd.f32 %v609_v33, %v546_v29  ;;  %v467_v2 = vpop.permute.xlu2 %466  ;;  %v1491_v29 = vld [vmem:[#allocation3 + $0xb0] sm:$0xff]  ;;  %v1486_v33 = vld [vmem:[#allocation3 + $0x88] sm:$0xff] }
  0xdd   : > { %v657_v34 = vadd.f32 %v604_v32, %v545_v54  ;;  %v540_v5 = vmul.f32 %v467_v2, %v444_v61  ;;  %v1474_v54 = vld [vmem:[#allocation3 + $0x28] sm:$0xff]  ;;  %v1480_v32 = vld [vmem:[#allocation3 + $0x58] sm:$0xff] }
  0xdf   : > { %v718_v38 = vpack.c.bf16 %v658_v36, %v657_v34 }
  0xe1   : > { %871 = vmatpush.bf16.msra.mxu0 %v718_v38  ;;  %1505 = vmatpush.bf16.msra.mxu1 %v718_v38 }
  0xe2   : > { %1506 = vmatpush.bf16.msra.mxu2 %v718_v38  ;;  %1507 = vmatpush.bf16.msra.mxu3 %v718_v38 }
  0xe3   : > { %v594_v42 = vpop.permute.xlu1 %593 }
  0xe4   : > { %v487_v43 = vpop.permute.xlu0 %486  ;;  %v655_v39 = vadd.f32 %v594_v42, %v543_v30 }
  0xe5   : > { %v544_v44 = vmul.f32 %v487_v43, %v448_v40 }
  0xe7   : > { %v656_v46 = vadd.f32 %v599_v41, %v544_v44 }
  0xe9   : > { %v717_v47 = vpack.c.bf16 %v656_v46, %v655_v39 }
  0xeb   : > { %872 = vmatpush.bf16.msra.mxu0 %v717_v47  ;;  %1508 = vmatpush.bf16.msra.mxu1 %v717_v47  ;;  %v477_v49 = vpop.permute.xlu1 %476 }
  0xec   : > { %1509 = vmatpush.bf16.msra.mxu2 %v717_v47  ;;  %1510 = vmatpush.bf16.msra.mxu3 %v717_v47  ;;  %v472_v13 = vpop.permute.xlu0 %471  ;;  %v542_v56 = vmul.f32 %v477_v49, %v446_v52 }
  0xed   : > { %v541_v53 = vmul.f32 %v472_v13, %v445_v19 }
  0xef   : > { %v653_v35 = vadd.f32 %v584_v51, %v541_v53 }
  0xf3   : > { %v462_v59 = vpop.permute.xlu1 %461 }
  0xf4   : > { %v589_v57 = vpop.permute.xlu0 %588  ;;  %v539_v26 = vmul.f32 %v462_v59, %v443_v63 }
  0xf5   : > { %v654_v60 = vadd.f32 %v589_v57, %v542_v56 }
  0xf7   : > { %v716_v62 = vpack.c.bf16 %v654_v60, %v653_v35 }
  0xf9   : > { %873 = vmatpush.bf16.msra.mxu0 %v716_v62  ;;  %1511 = vmatpush.bf16.msra.mxu1 %v716_v62 }
  0xfa   : > { %1512 = vmatpush.bf16.msra.mxu2 %v716_v62  ;;  %1513 = vmatpush.bf16.msra.mxu3 %v716_v62 }
  0xfb   : > { %v579_v4 = vpop.permute.xlu1 %578 }
  0xfc   : > { %v574_v3 = vpop.permute.xlu0 %573  ;;  %v652_v25 = vadd.f32 %v579_v4, %v540_v5 }
  0xfd   : > { %v651_v9 = vadd.f32 %v574_v3, %v539_v26 }
  0xff   : > { %v715_v1 = vpack.c.bf16 %v652_v25, %v651_v9 }
 0x101   : > { %874 = vmatpush.bf16.msra.mxu0 %v715_v1  ;;  %1514 = vmatpush.bf16.msra.mxu1 %v715_v1 }
 0x102   : > { %1515 = vmatpush.bf16.msra.mxu2 %v715_v1  ;;  %1516 = vmatpush.bf16.msra.mxu3 %v715_v1 }
 0x104   : > { %875 = vmatmul.bf16.vlgmr.msra.gmra.mxu0 %v1469_v6  ;;  %905 = vmatmul.bf16.vlgmr.msra.gmra.mxu1 %v1475_v7 }
 0x105   : > { %935 = vmatmul.bf16.vlgmr.msra.gmra.mxu2 %v1481_v8  ;;  %965 = vmatmul.bf16.vlgmr.msra.gmra.mxu3 %v1487_v10 }
 0x114   : > { %880 = vmatmul.bf16.gmra.mxu0 %v1470_v23  ;;  %910 = vmatmul.bf16.gmra.mxu1 %v1476_v11 }
 0x115   : > { %940 = vmatmul.bf16.gmra.mxu2 %v1482_v12  ;;  %970 = vmatmul.bf16.gmra.mxu3 %v1488_v14 }
 0x124   : > { %885 = vmatmul.bf16.gmra.mxu0 %v1471_v15  ;;  %915 = vmatmul.bf16.gmra.mxu1 %v1477_v16 }
 0x125   : > { %945 = vmatmul.bf16.gmra.mxu2 %v1483_v58  ;;  %975 = vmatmul.bf16.gmra.mxu3 %v1489_v17 }
 0x134   : > { %890 = vmatmul.bf16.gmra.mxu0 %v1472_v18  ;;  %920 = vmatmul.bf16.gmra.mxu1 %v1478_v0 }
 0x135   : > { %950 = vmatmul.bf16.gmra.mxu2 %v1484_v20  ;;  %980 = vmatmul.bf16.gmra.mxu3 %v1490_v21 }
 0x144   : > { %895 = vmatmul.bf16.gmra.mxu0 %v1473_v22  ;;  %925 = vmatmul.bf16.gmra.mxu1 %v1479_v27 }
 0x145   : > { %955 = vmatmul.bf16.gmra.mxu2 %v1485_v28  ;;  %985 = vmatmul.bf16.gmra.mxu3 %v1491_v29 }
 0x154   : > { %900 = vmatmul.bf16.gmra.mxu0 %v1474_v54  ;;  %930 = vmatmul.bf16.gmra.mxu1 %v1480_v32 }
 0x155   : > { %960 = vmatmul.bf16.gmra.mxu2 %v1486_v33  ;;  %990 = vmatmul.bf16.gmra.mxu3 %v1492_v50 }
 0x181   : > { %v876_v34 = vpop.f32.mrf.mxu0  ;;  %v906_v36 = vpop.f32.mrf.mxu1 }
 0x182   : > { %996 = vst [vmem:[%s2079_s27] sm:$0xff] %v876_v34 }
 0x183   : > { %1008 = vst [vmem:[%s2079_s27 + $0x60] sm:$0xff] %v906_v36 }
 0x188   : > { %v936_v37 = vpop.f32.mrf.mxu2  ;;  %v966_v38 = vpop.f32.mrf.mxu3 }
 0x189   : > { %1020 = vst [vmem:[%s2079_s27 + $0xc0] sm:$0xff] %v936_v37  ;;  %v878_v24 = vpop.f32.mrf.mxu0  ;;  %v908_v40 = vpop.f32.mrf.mxu1  ;;  %v1177_v15 = vld [vmem:[%s2079_s27] sm:$0xff] (%p1768_p7) }
 0x18a   : > { %1032 = vst [vmem:[%s2079_s27 + $0x120] sm:$0xff] %v966_v38  ;;  %v1201_v54 = vld [vmem:[%s2079_s27 + $0x60] sm:$0xff] (%p1768_p7) }
 0x18b   : > { %997 = vst [vmem:[%s2079_s27 + $0x8] sm:$0xff] %v878_v24 }
 0x18c   : > { %1009 = vst [vmem:[%s2079_s27 + $0x68] sm:$0xff] %v908_v40 }
 0x18d   : > { %1178 = vst [vmem:[%s2138_s28] sm:$0xff] (%p1768_p7), %v1177_v15 }
 0x18e   : > { %1202 = vst [vmem:[%s2138_s28 + $0x120] sm:$0xff] (%p1768_p7), %v1201_v54 }
 0x190   : > { %v938_v41 = vpop.f32.mrf.mxu2  ;;  %v968_v42 = vpop.f32.mrf.mxu3 }
 0x191   : > { %1021 = vst [vmem:[%s2079_s27 + $0xc8] sm:$0xff] %v938_v41  ;;  %v881_v43 = vpop.f32.mrf.mxu0  ;;  %v911_v30 = vpop.f32.mrf.mxu1 }
 0x192   : > { %1033 = vst [vmem:[%s2079_s27 + $0x128] sm:$0xff] %v968_v42  ;;  %v1179_v16 = vld [vmem:[%s2079_s27 + $0x8] sm:$0xff] (%p1768_p7) }
 0x193   : > { %998 = vst [vmem:[%s2079_s27 + $0x10] sm:$0xff] %v881_v43  ;;  %v1203_v32 = vld [vmem:[%s2079_s27 + $0x68] sm:$0xff] (%p1768_p7)  ;;  %v1225_v43 = vld [vmem:[%s2079_s27 + $0xc0] sm:$0xff] (%p1768_p7) }
 0x194   : > { %1010 = vst [vmem:[%s2079_s27 + $0x70] sm:$0xff] %v911_v30 }
 0x195   : > { %1180 = vst [vmem:[%s2138_s28 + $0x18] sm:$0xff] (%p1768_p7), %v1179_v16 }
 0x196   : > { %1204 = vst [vmem:[%s2138_s28 + $0x138] sm:$0xff] (%p1768_p7), %v1203_v32 }
 0x197   : > { %1226 = vst [vmem:[%s2138_s28 + $0x240] sm:$0xff] (%p1768_p7), %v1225_v43 }
 0x198   : > { %v941_v44 = vpop.f32.mrf.mxu2  ;;  %v971_v39 = vpop.f32.mrf.mxu3  ;;  %v1227_v30 = vld [vmem:[%s2079_s27 + $0xc8] sm:$0xff] (%p1768_p7) }
 0x199   : > { %1022 = vst [vmem:[%s2079_s27 + $0xd0] sm:$0xff] %v941_v44  ;;  %v883_v46 = vpop.f32.mrf.mxu0  ;;  %v913_v47 = vpop.f32.mrf.mxu1 }
 0x19a   : > { %1034 = vst [vmem:[%s2079_s27 + $0x130] sm:$0xff] %v971_v39  ;;  %v1181_v58 = vld [vmem:[%s2079_s27 + $0x10] sm:$0xff] (%p1768_p7) }
 0x19b   : > { %999 = vst [vmem:[%s2079_s27 + $0x18] sm:$0xff] %v883_v46  ;;  %v1205_v33 = vld [vmem:[%s2079_s27 + $0x70] sm:$0xff] (%p1768_p7) }
 0x19c   : > { %1011 = vst [vmem:[%s2079_s27 + $0x78] sm:$0xff] %v913_v47 }
 0x19d   : > { %1182 = vst [vmem:[%s2138_s28 + $0x30] sm:$0xff] (%p1768_p7), %v1181_v58 }
 0x19e   : > { %1206 = vst [vmem:[%s2138_s28 + $0x150] sm:$0xff] (%p1768_p7), %v1205_v33 }
 0x19f   : > { %1228 = vst [vmem:[%s2138_s28 + $0x258] sm:$0xff] (%p1768_p7), %v1227_v30 }
 0x1a0   : > { %v943_v45 = vpop.f32.mrf.mxu2  ;;  %v973_v48 = vpop.f32.mrf.mxu3  ;;  %v1229_v44 = vld [vmem:[%s2079_s27 + $0xd0] sm:$0xff] (%p1768_p7) }
 0x1a1   : > { %1023 = vst [vmem:[%s2079_s27 + $0xd8] sm:$0xff] %v943_v45  ;;  %v886_v49 = vpop.f32.mrf.mxu0  ;;  %v916_v13 = vpop.f32.mrf.mxu1 }
 0x1a2   : > { %1035 = vst [vmem:[%s2079_s27 + $0x138] sm:$0xff] %v973_v48  ;;  %v1183_v17 = vld [vmem:[%s2079_s27 + $0x18] sm:$0xff] (%p1768_p7) }
 0x1a3   : > { %1000 = vst [vmem:[%s2079_s27 + $0x20] sm:$0xff] %v886_v49  ;;  %v1207_v50 = vld [vmem:[%s2079_s27 + $0x78] sm:$0xff] (%p1768_p7) }
 0x1a4   : > { %1012 = vst [vmem:[%s2079_s27 + $0x80] sm:$0xff] %v916_v13 }
 0x1a5   : > { %1184 = vst [vmem:[%s2138_s28 + $0x48] sm:$0xff] (%p1768_p7), %v1183_v17 }
 0x1a6   : > { %1208 = vst [vmem:[%s2138_s28 + $0x168] sm:$0xff] (%p1768_p7), %v1207_v50 }
 0x1a7   : > { %1230 = vst [vmem:[%s2138_s28 + $0x270] sm:$0xff] (%p1768_p7), %v1229_v44 }
 0x1a8   : > { %v946_v19 = vpop.f32.mrf.mxu2  ;;  %v976_v51 = vpop.f32.mrf.mxu3  ;;  %v1231_v39 = vld [vmem:[%s2079_s27 + $0xd8] sm:$0xff] (%p1768_p7) }
 0x1a9   : > { %1024 = vst [vmem:[%s2079_s27 + $0xe0] sm:$0xff] %v946_v19  ;;  %v888_v52 = vpop.f32.mrf.mxu0  ;;  %v918_v53 = vpop.f32.mrf.mxu1 }
 0x1aa   : > { %1036 = vst [vmem:[%s2079_s27 + $0x140] sm:$0xff] %v976_v51  ;;  %v1185_v18 = vld [vmem:[%s2079_s27 + $0x20] sm:$0xff] (%p1768_p7) }
 0x1ab   : > { %1001 = vst [vmem:[%s2079_s27 + $0x28] sm:$0xff] %v888_v52  ;;  %v1209_v34 = vld [vmem:[%s2079_s27 + $0x80] sm:$0xff] (%p1768_p7) }
 0x1ac   : > { %1013 = vst [vmem:[%s2079_s27 + $0x88] sm:$0xff] %v918_v53  ;;  %v1249_v52 = vld [vmem:[%s2079_s27 + $0x120] sm:$0xff] (%p1768_p7)  ;;  %v1251_v53 = vld [vmem:[%s2079_s27 + $0x128] sm:$0xff] (%p1768_p7) }
 0x1ad   : > { %1186 = vst [vmem:[%s2138_s28 + $0x60] sm:$0xff] (%p1768_p7), %v1185_v18 }
 0x1ae   : > { %1210 = vst [vmem:[%s2138_s28 + $0x180] sm:$0xff] (%p1768_p7), %v1209_v34 }
 0x1af   : > { %1232 = vst [vmem:[%s2138_s28 + $0x288] sm:$0xff] (%p1768_p7), %v1231_v39 }
 0x1b0   : > { %v948_v55 = vpop.f32.mrf.mxu2  ;;  %v978_v56 = vpop.f32.mrf.mxu3  ;;  %v1233_v46 = vld [vmem:[%s2079_s27 + $0xe0] sm:$0xff] (%p1768_p7)  ;;  %1250 = vst [vmem:[%s2138_s28 + $0x360] sm:$0xff] (%p1768_p7), %v1249_v52 }
 0x1b1   : > { %1025 = vst [vmem:[%s2079_s27 + $0xe8] sm:$0xff] %v948_v55  ;;  %v891_v31 = vpop.f32.mrf.mxu0  ;;  %v921_v57 = vpop.f32.mrf.mxu1  ;;  %v1253_v55 = vld [vmem:[%s2079_s27 + $0x130] sm:$0xff] (%p1768_p7) }
 0x1b2   : > { %1037 = vst [vmem:[%s2079_s27 + $0x148] sm:$0xff] %v978_v56  ;;  %v1187_v0 = vld [vmem:[%s2079_s27 + $0x28] sm:$0xff] (%p1768_p7)  ;;  %v1255_v56 = vld [vmem:[%s2079_s27 + $0x138] sm:$0xff] (%p1768_p7) }
 0x1b3   : > { %1002 = vst [vmem:[%s2079_s27 + $0x30] sm:$0xff] %v891_v31  ;;  %v1211_v36 = vld [vmem:[%s2079_s27 + $0x88] sm:$0xff] (%p1768_p7)  ;;  %v1257_v31 = vld [vmem:[%s2079_s27 + $0x140] sm:$0xff] (%p1768_p7) }
 0x1b4   : > { %1014 = vst [vmem:[%s2079_s27 + $0x90] sm:$0xff] %v921_v57 }
 0x1b5   : > { %1188 = vst [vmem:[%s2138_s28 + $0x78] sm:$0xff] (%p1768_p7), %v1187_v0 }
 0x1b6   : > { %1212 = vst [vmem:[%s2138_s28 + $0x198] sm:$0xff] (%p1768_p7), %v1211_v36 }
 0x1b7   : > { %1234 = vst [vmem:[%s2138_s28 + $0x2a0] sm:$0xff] (%p1768_p7), %v1233_v46 }
 0x1b8   : > { %v951_v59 = vpop.f32.mrf.mxu2  ;;  %v981_v35 = vpop.f32.mrf.mxu3  ;;  %v1235_v47 = vld [vmem:[%s2079_s27 + $0xe8] sm:$0xff] (%p1768_p7)  ;;  %1252 = vst [vmem:[%s2138_s28 + $0x378] sm:$0xff] (%p1768_p7), %v1251_v53 }
 0x1b9   : > { %1026 = vst [vmem:[%s2079_s27 + $0xf0] sm:$0xff] %v951_v59  ;;  %v893_v60 = vpop.f32.mrf.mxu0  ;;  %v923_v61 = vpop.f32.mrf.mxu1  ;;  %v1259_v57 = vld [vmem:[%s2079_s27 + $0x148] sm:$0xff] (%p1768_p7) }
 0x1ba   : > { %1038 = vst [vmem:[%s2079_s27 + $0x150] sm:$0xff] %v981_v35  ;;  %v1189_v20 = vld [vmem:[%s2079_s27 + $0x30] sm:$0xff] (%p1768_p7) }
 0x1bb   : > { %1003 = vst [vmem:[%s2079_s27 + $0x38] sm:$0xff] %v893_v60  ;;  %v1213_v37 = vld [vmem:[%s2079_s27 + $0x90] sm:$0xff] (%p1768_p7) }
 0x1bc   : > { %1015 = vst [vmem:[%s2079_s27 + $0x98] sm:$0xff] %v923_v61 }
 0x1bd   : > { %1190 = vst [vmem:[%s2138_s28 + $0x90] sm:$0xff] (%p1768_p7), %v1189_v20 }
 0x1be   : > { %1214 = vst [vmem:[%s2138_s28 + $0x1b0] sm:$0xff] (%p1768_p7), %v1213_v37 }
 0x1bf   : > { %1236 = vst [vmem:[%s2138_s28 + $0x2b8] sm:$0xff] (%p1768_p7), %v1235_v47 }
 0x1c0   : > { %v953_v62 = vpop.f32.mrf.mxu2  ;;  %v983_v63 = vpop.f32.mrf.mxu3  ;;  %v1237_v45 = vld [vmem:[%s2079_s27 + $0xf0] sm:$0xff] (%p1768_p7)  ;;  %1254 = vst [vmem:[%s2138_s28 + $0x390] sm:$0xff] (%p1768_p7), %v1253_v55 }
 0x1c1   : > { %1027 = vst [vmem:[%s2079_s27 + $0xf8] sm:$0xff] %v953_v62  ;;  %v896_v2 = vpop.f32.mrf.mxu0  ;;  %v926_v5 = vpop.f32.mrf.mxu1  ;;  %v1261_v59 = vld [vmem:[%s2079_s27 + $0x150] sm:$0xff] (%p1768_p7) }
 0x1c2   : > { %1039 = vst [vmem:[%s2079_s27 + $0x158] sm:$0xff] %v983_v63  ;;  %v1191_v21 = vld [vmem:[%s2079_s27 + $0x38] sm:$0xff] (%p1768_p7) }
 0x1c3   : > { %1004 = vst [vmem:[%s2079_s27 + $0x40] sm:$0xff] %v896_v2  ;;  %v1215_v38 = vld [vmem:[%s2079_s27 + $0x98] sm:$0xff] (%p1768_p7) }
 0x1c4   : > { %1016 = vst [vmem:[%s2079_s27 + $0xa0] sm:$0xff] %v926_v5 }
 0x1c5   : > { %1192 = vst [vmem:[%s2138_s28 + $0xa8] sm:$0xff] (%p1768_p7), %v1191_v21 }
 0x1c6   : > { %1216 = vst [vmem:[%s2138_s28 + $0x1c8] sm:$0xff] (%p1768_p7), %v1215_v38 }
 0x1c7   : > { %1238 = vst [vmem:[%s2138_s28 + $0x2d0] sm:$0xff] (%p1768_p7), %v1237_v45 }
 0x1c8   : > { %v956_v26 = vpop.f32.mrf.mxu2  ;;  %v986_v3 = vpop.f32.mrf.mxu3  ;;  %v1239_v48 = vld [vmem:[%s2079_s27 + $0xf8] sm:$0xff] (%p1768_p7)  ;;  %1256 = vst [vmem:[%s2138_s28 + $0x3a8] sm:$0xff] (%p1768_p7), %v1255_v56 }
 0x1c9   : > { %1028 = vst [vmem:[%s2079_s27 + $0x100] sm:$0xff] %v956_v26  ;;  %v898_v4 = vpop.f32.mrf.mxu0  ;;  %v928_v9 = vpop.f32.mrf.mxu1  ;;  %v1263_v35 = vld [vmem:[%s2079_s27 + $0x158] sm:$0xff] (%p1768_p7) }
 0x1ca   : > { %1040 = vst [vmem:[%s2079_s27 + $0x160] sm:$0xff] %v986_v3  ;;  %v1193_v22 = vld [vmem:[%s2079_s27 + $0x40] sm:$0xff] (%p1768_p7) }
 0x1cb   : > { %1005 = vst [vmem:[%s2079_s27 + $0x48] sm:$0xff] %v898_v4  ;;  %v1217_v24 = vld [vmem:[%s2079_s27 + $0xa0] sm:$0xff] (%p1768_p7) }
 0x1cc   : > { %1017 = vst [vmem:[%s2079_s27 + $0xa8] sm:$0xff] %v928_v9 }
 0x1cd   : > { %1194 = vst [vmem:[%s2138_s28 + $0xc0] sm:$0xff] (%p1768_p7), %v1193_v22 }
 0x1ce   : > { %1218 = vst [vmem:[%s2138_s28 + $0x1e0] sm:$0xff] (%p1768_p7), %v1217_v24 }
 0x1cf   : > { %1240 = vst [vmem:[%s2138_s28 + $0x2e8] sm:$0xff] (%p1768_p7), %v1239_v48 }
 0x1d0   : > { %v958_v25 = vpop.f32.mrf.mxu2  ;;  %v988_v1 = vpop.f32.mrf.mxu3  ;;  %v1241_v49 = vld [vmem:[%s2079_s27 + $0x100] sm:$0xff] (%p1768_p7)  ;;  %1258 = vst [vmem:[%s2138_s28 + $0x3c0] sm:$0xff] (%p1768_p7), %v1257_v31 }
 0x1d1   : > { %1029 = vst [vmem:[%s2079_s27 + $0x108] sm:$0xff] %v958_v25  ;;  %v901_v6 = vpop.f32.mrf.mxu0  ;;  %v931_v7 = vpop.f32.mrf.mxu1  ;;  %v1265_v60 = vld [vmem:[%s2079_s27 + $0x160] sm:$0xff] (%p1768_p7) }
 0x1d2   : > { %1041 = vst [vmem:[%s2079_s27 + $0x168] sm:$0xff] %v988_v1  ;;  %v1195_v27 = vld [vmem:[%s2079_s27 + $0x48] sm:$0xff] (%p1768_p7) }
 0x1d3   : > { %1006 = vst [vmem:[%s2079_s27 + $0x50] sm:$0xff] %v901_v6  ;;  %v1219_v40 = vld [vmem:[%s2079_s27 + $0xa8] sm:$0xff] (%p1768_p7) }
 0x1d4   : > { %1018 = vst [vmem:[%s2079_s27 + $0xb0] sm:$0xff] %v931_v7 }
 0x1d5   : > { %1196 = vst [vmem:[%s2138_s28 + $0xd8] sm:$0xff] (%p1768_p7), %v1195_v27 }
 0x1d6   : > { %1220 = vst [vmem:[%s2138_s28 + $0x1f8] sm:$0xff] (%p1768_p7), %v1219_v40 }
 0x1d7   : > { %1242 = vst [vmem:[%s2138_s28 + $0x300] sm:$0xff] (%p1768_p7), %v1241_v49 }
 0x1d8   : > { %v961_v8 = vpop.f32.mrf.mxu2  ;;  %v991_v10 = vpop.f32.mrf.mxu3  ;;  %v1243_v13 = vld [vmem:[%s2079_s27 + $0x108] sm:$0xff] (%p1768_p7)  ;;  %1260 = vst [vmem:[%s2138_s28 + $0x3d8] sm:$0xff] (%p1768_p7), %v1259_v57 }
 0x1d9   : > { %1030 = vst [vmem:[%s2079_s27 + $0x110] sm:$0xff] %v961_v8  ;;  %v903_v23 = vpop.f32.mrf.mxu0  ;;  %v933_v11 = vpop.f32.mrf.mxu1  ;;  %v1267_v61 = vld [vmem:[%s2079_s27 + $0x168] sm:$0xff] (%p1768_p7) }
 0x1da   : > { %1042 = vst [vmem:[%s2079_s27 + $0x170] sm:$0xff] %v991_v10  ;;  %v1197_v28 = vld [vmem:[%s2079_s27 + $0x50] sm:$0xff] (%p1768_p7) }
 0x1db   : > { %1007 = vst [vmem:[%s2079_s27 + $0x58] sm:$0xff] %v903_v23  ;;  %v1221_v41 = vld [vmem:[%s2079_s27 + $0xb0] sm:$0xff] (%p1768_p7) }
 0x1dc   : > { %1019 = vst [vmem:[%s2079_s27 + $0xb8] sm:$0xff] %v933_v11 }
 0x1dd   : > { %1198 = vst [vmem:[%s2138_s28 + $0xf0] sm:$0xff] (%p1768_p7), %v1197_v28 }
 0x1de   : > { %1050 = sbr.rel (!%p1768_p7) target bundleno = 492 (0x1ec), region = 82  ;;  %1222 = vst [vmem:[%s2138_s28 + $0x210] sm:$0xff] (%p1768_p7), %v1221_v41 }
 0x1df   : > { %1244 = vst [vmem:[%s2138_s28 + $0x318] sm:$0xff] (%p1768_p7), %v1243_v13 }
 0x1e0   : > { %v963_v12 = vpop.f32.mrf.mxu2  ;;  %v993_v14 = vpop.f32.mrf.mxu3  ;;  %v1245_v19 = vld [vmem:[%s2079_s27 + $0x110] sm:$0xff] (%p1768_p7)  ;;  %1262 = vst [vmem:[%s2138_s28 + $0x3f0] sm:$0xff] (%p1768_p7), %v1261_v59 }
 0x1e1   : > { %1031 = vst [vmem:[%s2079_s27 + $0x118] sm:$0xff] %v963_v12  ;;  %v1269_v62 = vld [vmem:[%s2079_s27 + $0x170] sm:$0xff] (%p1768_p7) }
 0x1e2   : > { %1043 = vst [vmem:[%s2079_s27 + $0x178] sm:$0xff] %v993_v14  ;;  %v1199_v29 = vld [vmem:[%s2079_s27 + $0x58] sm:$0xff] (%p1768_p7) }
 0x1e3   : > { %1200 = vst [vmem:[%s2138_s28 + $0x108] sm:$0xff] %v1199_v29  ;;  %v1223_v42 = vld [vmem:[%s2079_s27 + $0xb8] sm:$0xff] }
 0x1e4   : > { %1224 = vst [vmem:[%s2138_s28 + $0x228] sm:$0xff] %v1223_v42 }
 0x1e5   : > { %1246 = vst [vmem:[%s2138_s28 + $0x330] sm:$0xff] %v1245_v19 }
 0x1e6   : > { %1264 = vst [vmem:[%s2138_s28 + $0x408] sm:$0xff] %v1263_v35 }
 0x1e7   : > { %1266 = vst [vmem:[%s2138_s28 + $0x420] sm:$0xff] %v1265_v60 }
 0x1e8   : > { %v1247_v51 = vld [vmem:[%s2079_s27 + $0x118] sm:$0xff]  ;;  %1268 = vst [vmem:[%s2138_s28 + $0x438] sm:$0xff] %v1267_v61 }
 0x1e9   : > { %1248 = vst [vmem:[%s2138_s28 + $0x348] sm:$0xff] %v1247_v51  ;;  %v1271_v63 = vld [vmem:[%s2079_s27 + $0x178] sm:$0xff] }
 0x1ea   : > { %1270 = vst [vmem:[%s2138_s28 + $0x450] sm:$0xff] %v1269_v62 }
 0x1eb   : > { %1272 = vst [vmem:[%s2138_s28 + $0x468] sm:$0xff] %v1271_v63 }
 0x1ec PF: > { %s15_s21 = sadd.s32 1, %s1683_s21   ;;  %s2264_s15 = smov %s1663_s16 }
 0x1ed   : > { %p12_p1 = scmp.ge.s32.totalorder %s15_s21, 8   ;;  %s2265_s16 = smov %s1789_s10 }
 0x1ee   : > { %s2266_s17 = smov %s1675_s19  ;;  %s2267_s18 = smov %s1679_s20 }
 0x1ef   : > { %s2268_s19 = smov %s2271_s23  ;;  %s2269_s20 = smov %s2275_s24 }
 0x1f0   :  { %14 = sbr.rel (!%p12_p1) target bundleno = 4 (0x4), region = 152 }
 0x1f5   :  { %1288 = vsyncpa [#allocation4], 1 }
 0x1f6   :  { %1290 = vsyncpa [#allocation4 + $0x1], 1 }

</bundles_post_ra>
